<compile_context>
chip_gen: v7x
topology: tpu7x:2x2x1
jax: 0.10.0
libtpu: 0.0.40
codegen_flags: <defaults>
</compile_context>

<pallas_src>
import functools

import jax
import jax.numpy as jnp
import numpy as np
from jax.experimental import pallas as pl
from jax.experimental.pallas import tpu as pltpu


# ----------------------------------------------------------------------------- kernel
def _welch_kernel(bg_ref, cos_ref, sin_ref, so_ref, out_ref, frames_ref, *,
                  W, nstride, P, Ft, cb, average):
    # bg_ref    : (cb, Lu)     cb channels of (trimmed) background, f32
    # cos_ref   : (P, Ft)      window-folded cos DFT tile, bf16 (zero-padded lanes)
    # sin_ref   : (P, Ft)      window-folded sin DFT tile, bf16 (zero-padded lanes)
    # so_ref    : (1, Ft)      scale * one-sided * 1/median_bias (f32, zero pad)
    # out_ref   : (cb, Ft)     PSD tile for this (channel block, freq tile)
    # frames_ref: (W*cb, P)    bf16 frame cache, persists across the inner freq axis

    f = pl.program_id(1)

    # Build the bf16 frame matrix once per channel block (freq axis is innermost and
    # "arbitrary", so the scratch written at f == 0 is valid for all later f tiles).
    @pl.when(f == 0)
    def _build_frames():
        xw = bg_ref[...].astype(jnp.bfloat16)                       # cast ONCE (cb, Lu)
        # Frame-major layout: rows w*cb .. w*cb+cb-1 hold frame w of every channel.
        # fast=True -> no per-segment detrend.
        # (nstride not a multiple of 128 costs a lane rotate per slice; acceptable.)
        frames_ref[...] = jnp.concatenate(
            [xw[:, w * nstride: w * nstride + P] for w in range(W)], axis=0)

    frames = frames_ref[...]                                        # (W*cb, P) bf16

    # Real DFT of every frame: two bf16 MXU matmuls, f32 accumulation.
    re = jnp.dot(frames, cos_ref[...], preferred_element_type=jnp.float32)
    im = jnp.dot(frames, sin_ref[...], preferred_element_type=jnp.float32)
    p = (re * re + im * im) * so_ref[...]                           # (W*cb, Ft)
    p3 = p.reshape(W, cb, Ft)                                       # (W, cb, Ft)

    if average == "median":
        # Median over the window axis via rank counting (no sort on TPU):
        # an element equals the k-th order statistic iff (#strictly-smaller <= k) and
        # (#smaller-or-equal > k); all qualifying elements share the same value, so a
        # max-reduce over the window axis extracts it.
        lt = jnp.zeros((W, cb, Ft), jnp.int32)
        le = jnp.zeros((W, cb, Ft), jnp.int32)
        for j in range(W):
            pj = p3[j]                                              # (cb, Ft)
            lt = lt + (pj < p3).astype(jnp.int32)
            le = le + (pj <= p3).astype(jnp.int32)

        def order_stat(k):
            cond = (lt <= k) & (le > k)
            return jnp.max(jnp.where(cond, p3, -jnp.inf), axis=0)   # (cb, Ft)

        if W % 2 == 1:
            out = order_stat((W - 1) // 2)
        else:
            out = 0.5 * (order_stat(W // 2 - 1) + order_stat(W // 2))
    else:  # "mean"
        out = jnp.mean(p3, axis=0)

    out_ref[...] = out


# ---------------------------------------------------------------------------- wrapper
def _median_bias(n):
    m = (n - 1) // 2
    return 1.0 + sum(1.0 / (2 * i + 1) - 1.0 / (2 * i) for i in range(1, m + 1))


def welch_psd_pallas(background, sample_rate, nperseg, nstride,
                     average="median", channel_block=32, freq_block=512):
    """background: (..., time) float -> PSD (..., nperseg // 2 + 1) float32."""
    lead = background.shape[:-1]
    L = background.shape[-1]
    bg = background.reshape(-1, L).astype(jnp.float32)
    C = bg.shape[0]

    P = int(nperseg)
    nstride = int(nstride)
    F = P // 2 + 1
    W = (L - P) // nstride + 1
    assert W >= 1, "background too short for one FFT window"

    # Channel block: multiple of 8, no larger than needed to cover C.
    cb = int(min(channel_block, 8 * ((C + 7) // 8)))
    cb = max(8, (cb // 8) * 8)
    Cp = cb * ((C + cb - 1) // cb)

    # Lane-dense frequency tiling (Ft multiple of 128, Fp = n_ft * Ft >= F).
    Fbase = 128 * ((F + 127) // 128)
    Ft = max(128, (int(min(freq_block, Fbase)) // 128) * 128)
    n_ft = (Fbase + Ft - 1) // Ft
    Fp = Ft * n_ft

    # Trim the background to the samples actually used by the W frames.
    Lu = (W - 1) * nstride + P

    # ---- host-side (float64) constants ---------------------------------------------
    n = np.arange(P, dtype=np.float64)
    window = 0.5 - 0.5 * np.cos(2.0 * np.pi * n / P)    # periodic Hann (torch default)
    scale = 1.0 / (float(sample_rate) * np.sum(window ** 2))
    inv_bias = 1.0 / _median_bias(W) if average == "median" else 1.0

    # Real-DFT matrices with the window folded in; reduce n*k mod P in integers before
    # scaling by 2*pi/P so the angles stay exact for large P.
    nk = np.outer(np.arange(P, dtype=np.int64), np.arange(F, dtype=np.int64)) % P
    ang = 2.0 * np.pi * nk.astype(np.float64) / P
    cosw = np.zeros((P, Fp), dtype=np.float64)
    sinw = np.zeros((P, Fp), dtype=np.float64)
    cosw[:, :F] = window[:, None] * np.cos(ang)
    sinw[:, :F] = window[:, None] * np.sin(ang)         # sign irrelevant: |.|^2 below

    onesided = np.ones((F,), dtype=np.float64)
    if P % 2 == 0:
        onesided[1:-1] = 2.0
    else:
        onesided[1:] = 2.0
    so = np.zeros((1, Fp), dtype=np.float64)
    so[0, :F] = scale * onesided * inv_bias             # median bias folded in

    cos_bf16 = jnp.asarray(cosw.astype(np.float32)).astype(jnp.bfloat16)
    sin_bf16 = jnp.asarray(sinw.astype(np.float32)).astype(jnp.bfloat16)
    so_f32 = jnp.asarray(so.astype(np.float32))

    bg2 = jnp.pad(bg[:, :Lu], ((0, Cp - C), (0, 0)))    # zero-pad channels, trim time

    # VMEM budget estimate (double-buffered blocks + scratch + intermediate headroom),
    # clamped so it is safe on every chip generation (v7x physical VMEM = 64 MiB/TC).
    est = (2 * cb * Lu * 4                    # bg block (x2 buffers)
           + 2 * 2 * P * Ft * 2               # cos + sin blocks (bf16, x2 buffers)
           + 2 * 8 * Ft * 4                   # so block
           + 2 * cb * Ft * 4                  # out block
           + W * cb * P * 2                   # bf16 frame cache scratch
           + 8 * W * cb * Ft * 4)             # periodogram / median intermediates
    vmem_limit = int(min(max(2 * est, 32 * 1024 * 1024), 112 * 1024 * 1024))

    kernel = functools.partial(
        _welch_kernel, W=W, nstride=nstride, P=P, Ft=Ft, cb=cb, average=average)

    psds = pl.pallas_call(
        kernel,
        out_shape=jax.ShapeDtypeStruct((Cp, Fp), jnp.float32),
        grid_spec=pltpu.PrefetchScalarGridSpec(
            num_scalar_prefetch=0,
            grid=(Cp // cb, n_ft),                               # channel outer, freq inner
            in_specs=[
                pl.BlockSpec((cb, Lu), lambda c, f: (c, 0)),     # channel block (trimmed)
                pl.BlockSpec((P, Ft), lambda c, f: (0, f)),      # cos DFT tile (bf16)
                pl.BlockSpec((P, Ft), lambda c, f: (0, f)),      # sin DFT tile (bf16)
                pl.BlockSpec((1, Ft), lambda c, f: (0, f)),      # scale*onesided/bias
            ],
            out_specs=pl.BlockSpec((cb, Ft), lambda c, f: (c, f)),
            scratch_shapes=[pltpu.VMEM((W * cb, P), jnp.bfloat16)],
        ),
        compiler_params=pltpu.CompilerParams(
            dimension_semantics=("parallel", "arbitrary"),
            vmem_limit_bytes=vmem_limit,
        ),
    )(bg2, cos_bf16, sin_bf16, so_f32)

    return psds[:C, :F].reshape(lead + (F,))


def psd_estimator_forward(X, *, length, sample_rate, fftlength,
                          overlap=None, average="median"):
    """JAX/Pallas equivalent of PsdEstimator.forward.  X: (batch, channel, time)."""
    size = int(length * sample_rate)
    nperseg = int(fftlength * sample_rate)
    if overlap is None:
        overlap = fftlength / 2
    nstride = nperseg - int(overlap * sample_rate)

    T = X.shape[-1]
    background = X[..., : T - size]
    X_tail = X[..., T - size:]
    if X.ndim == 3 and X.shape[0] == 2:
        background = background[0]
        X_tail = X_tail[1]

    psds = welch_psd_pallas(background.astype(jnp.float32),
                            sample_rate, nperseg, nstride, average)
    return X_tail, psds


# ---------------------------------------------------------------------- JAX reference
def _welch_ref(bg, sample_rate, nperseg, nstride, average="median"):
    C, L = bg.shape
    W = (L - nperseg) // nstride + 1
    F = nperseg // 2 + 1
    n = jnp.arange(nperseg, dtype=jnp.float32)
    window = 0.5 - 0.5 * jnp.cos(2.0 * jnp.pi * n / nperseg)
    scale = 1.0 / (sample_rate * jnp.sum(window ** 2))
    idx = jnp.arange(W)[:, None] * nstride + jnp.arange(nperseg)[None, :]
    frames = bg[:, idx] * window                                      # (C, W, P)
    spec = jnp.abs(jnp.fft.rfft(frames, axis=-1)) ** 2
    onesided = jnp.ones((F,))
    onesided = onesided.at[1:-1].set(2.0) if nperseg % 2 == 0 else onesided.at[1:].set(2.0)
    spec = spec * onesided * scale
    if average == "median":
        return jnp.median(spec, axis=1) / _median_bias(W)
    return jnp.mean(spec, axis=1)


# ------------------------------------------------------------------------------ main
if __name__ == "__main__":
    # Small, consistent config: fs = 128 Hz, fftlength = 1 s (nperseg=128, nstride=64),
    # length = 2 s (size = 256).  X: (batch=2, channels=4, time=768) -> background has
    # 512 samples per channel -> 7 Welch windows.
    length, sample_rate, fftlength = 2.0, 128.0, 1.0
    B, C, T = 2, 4, 768

    key = jax.random.PRNGKey(0)
    X = jax.random.normal(key, (B, C, T), dtype=jnp.float32)

    X_tail, psds = psd_estimator_forward(
        X, length=length, sample_rate=sample_rate, fftlength=fftlength)
    X_tail = jax.block_until_ready(X_tail)
    psds = jax.block_until_ready(psds)

    assert X_tail.shape == (C, int(length * sample_rate))
    assert psds.shape == (C, int(fftlength * sample_rate) // 2 + 1)

    # Cross-check against a plain-JAX Welch reference (same fast=True semantics).
    # Tolerance accounts for bf16 DFT-matrix / frame inputs on the MXU (f32 accumulate).
    nperseg = int(fftlength * sample_rate)
    nstride = nperseg - int((fftlength / 2) * sample_rate)
    ref = _welch_ref(X[0, :, : T - int(length * sample_rate)].astype(jnp.float32),
                     sample_rate, nperseg, nstride)
    np.testing.assert_allclose(np.asarray(psds), np.asarray(ref), rtol=5e-2, atol=1e-6)
    np.testing.assert_allclose(np.asarray(X_tail),
                               np.asarray(X[1, :, T - int(length * sample_rate):]))

    print("KERNEL_OK")
</pallas_src>

<mosaic_0001>
module attributes {stable_mosaic.version = 11 : i64} {
  func.func @_welch_kernel(%arg0: i32, %arg1: i32, %arg2: memref<8x512xf32, #tpu.memory_space<vmem>>, %arg3: memref<128x128xbf16, #tpu.memory_space<vmem>>, %arg4: memref<128x128xbf16, #tpu.memory_space<vmem>>, %arg5: memref<1x128xf32, #tpu.memory_space<vmem>>, %arg6: memref<8x128xf32, #tpu.memory_space<vmem>>, %arg7: memref<56x128xbf16, #tpu.memory_space<vmem>>) attributes {dimension_semantics = [#tpu.dimension_semantics<parallel>, #tpu.dimension_semantics<arbitrary>], iteration_bounds = array<i64: 1, 1>, scalar_prefetch = 0 : i64, scratch_operands = 1 : i64, tpu.core_type = #tpu.core_type<tc>, window_params = [{transform_indices = @transform_0, window_bounds = array<i64: 8, 512>}, {transform_indices = @transform_1, window_bounds = array<i64: 128, 128>}, {transform_indices = @transform_2, window_bounds = array<i64: 128, 128>}, {transform_indices = @transform_3, window_bounds = array<i64: 1, 128>}, {transform_indices = @transform_4, window_bounds = array<i64: 8, 128>}]} {
    %c0_i32 = arith.constant 0 : i32
    %0 = arith.cmpi eq, %arg1, %c0_i32 : i32
    %1 = arith.extui %0 : i1 to i32
    %c0_i32_0 = arith.constant 0 : i32
    %2 = arith.cmpi ne, %1, %c0_i32_0 : i32
    scf.if %2 {
      %c0_16 = arith.constant 0 : index
      %c0_17 = arith.constant 0 : index
      %110 = vector.load %arg2[%c0_16, %c0_17] : memref<8x512xf32, #tpu.memory_space<vmem>>, vector<8x512xf32>
      %111 = arith.truncf %110 : vector<8x512xf32> to vector<8x512xbf16>
      %112 = vector.extract_strided_slice %111 {offsets = [0, 0], sizes = [8, 128], strides = [1, 1]} : vector<8x512xbf16> to vector<8x128xbf16>
      %113 = vector.extract_strided_slice %111 {offsets = [0, 64], sizes = [8, 128], strides = [1, 1]} : vector<8x512xbf16> to vector<8x128xbf16>
      %114 = vector.extract_strided_slice %111 {offsets = [0, 128], sizes = [8, 128], strides = [1, 1]} : vector<8x512xbf16> to vector<8x128xbf16>
      %115 = vector.extract_strided_slice %111 {offsets = [0, 192], sizes = [8, 128], strides = [1, 1]} : vector<8x512xbf16> to vector<8x128xbf16>
      %116 = vector.extract_strided_slice %111 {offsets = [0, 256], sizes = [8, 128], strides = [1, 1]} : vector<8x512xbf16> to vector<8x128xbf16>
      %117 = vector.extract_strided_slice %111 {offsets = [0, 320], sizes = [8, 128], strides = [1, 1]} : vector<8x512xbf16> to vector<8x128xbf16>
      %118 = vector.extract_strided_slice %111 {offsets = [0, 384], sizes = [8, 128], strides = [1, 1]} : vector<8x512xbf16> to vector<8x128xbf16>
      %119 = tpu.concatenate %112, %113, %114, %115, %116, %117, %118 in 0 : vector<8x128xbf16>, vector<8x128xbf16>, vector<8x128xbf16>, vector<8x128xbf16>, vector<8x128xbf16>, vector<8x128xbf16>, vector<8x128xbf16> -> vector<56x128xbf16>
      %c0_18 = arith.constant 0 : index
      %c0_19 = arith.constant 0 : index
      %120 = vector.load %arg7[%c0_18, %c0_19] : memref<56x128xbf16, #tpu.memory_space<vmem>>, vector<56x128xbf16>
      tpu.vector_store %arg7[%c0_18, %c0_19], %119 {strides = array<i32>} : memref<56x128xbf16, #tpu.memory_space<vmem>>, vector<56x128xbf16>,
    } else {
    }
    %c0 = arith.constant 0 : index
    %c0_1 = arith.constant 0 : index
    %3 = vector.load %arg7[%c0, %c0_1] : memref<56x128xbf16, #tpu.memory_space<vmem>>, vector<56x128xbf16>
    %c0_2 = arith.constant 0 : index
    %c0_3 = arith.constant 0 : index
    %4 = vector.load %arg3[%c0_2, %c0_3] : memref<128x128xbf16, #tpu.memory_space<vmem>>, vector<128x128xbf16>
    %cst = arith.constant dense<0.000000e+00> : vector<56x128xf32>
    %5 = tpu.matmul %3, %4, %cst {dimension_numbers = #tpu.dot_dimension_numbers<[1], [0], [0], [1], [0, 0, 1, 1], [], []>} : vector<56x128xbf16>, vector<128x128xbf16>, vector<56x128xf32> -> vector<56x128xf32>
    %c0_4 = arith.constant 0 : index
    %c0_5 = arith.constant 0 : index
    %6 = vector.load %arg4[%c0_4, %c0_5] : memref<128x128xbf16, #tpu.memory_space<vmem>>, vector<128x128xbf16>
    %cst_6 = arith.constant dense<0.000000e+00> : vector<56x128xf32>
    %7 = tpu.matmul %3, %6, %cst_6 {dimension_numbers = #tpu.dot_dimension_numbers<[1], [0], [0], [1], [0, 0, 1, 1], [], []>} : vector<56x128xbf16>, vector<128x128xbf16>, vector<56x128xf32> -> vector<56x128xf32>
    %8 = arith.mulf %5, %5 : vector<56x128xf32>
    %9 = arith.mulf %7, %7 : vector<56x128xf32>
    %10 = arith.addf %8, %9 : vector<56x128xf32>
    %c0_7 = arith.constant 0 : index
    %c0_8 = arith.constant 0 : index
    %11 = vector.load %arg5[%c0_7, %c0_8] : memref<1x128xf32, #tpu.memory_space<vmem>>, vector<1x128xf32>
    %12 = vector.broadcast %11 : vector<1x128xf32> to vector<56x128xf32>
    %13 = arith.mulf %10, %12 : vector<56x128xf32>
    %14 = vector.shape_cast %13 : vector<56x128xf32> to vector<7x8x128xf32>
    %c0_i32_9 = arith.constant 0 : i32
    %15 = vector.broadcast %c0_i32_9 : i32 to vector<7x8x128xi32>
    %c0_i32_10 = arith.constant 0 : i32
    %16 = vector.broadcast %c0_i32_10 : i32 to vector<7x8x128xi32>
    %17 = vector.extract_strided_slice %14 {offsets = [0, 0, 0], sizes = [1, 8, 128], strides = [1, 1, 1]} : vector<7x8x128xf32> to vector<1x8x128xf32>
    %18 = vector.shape_cast %17 : vector<1x8x128xf32> to vector<8x128xf32>
    %19 = vector.shape_cast %18 : vector<8x128xf32> to vector<1x8x128xf32>
    %20 = vector.broadcast %19 : vector<1x8x128xf32> to vector<7x8x128xf32>
    %21 = arith.cmpf olt, %20, %14 : vector<7x8x128xf32>
    %22 = arith.extui %21 : vector<7x8x128xi1> to vector<7x8x128xi32>
    %23 = arith.addi %15, %22 : vector<7x8x128xi32>
    %24 = vector.shape_cast %18 : vector<8x128xf32> to vector<1x8x128xf32>
    %25 = vector.broadcast %24 : vector<1x8x128xf32> to vector<7x8x128xf32>
    %26 = arith.cmpf ole, %25, %14 : vector<7x8x128xf32>
    %27 = arith.extui %26 : vector<7x8x128xi1> to vector<7x8x128xi32>
    %28 = arith.addi %16, %27 : vector<7x8x128xi32>
    %29 = vector.extract_strided_slice %14 {offsets = [1, 0, 0], sizes = [1, 8, 128], strides = [1, 1, 1]} : vector<7x8x128xf32> to vector<1x8x128xf32>
    %30 = vector.shape_cast %29 : vector<1x8x128xf32> to vector<8x128xf32>
    %31 = vector.shape_cast %30 : vector<8x128xf32> to vector<1x8x128xf32>
    %32 = vector.broadcast %31 : vector<1x8x128xf32> to vector<7x8x128xf32>
    %33 = arith.cmpf olt, %32, %14 : vector<7x8x128xf32>
    %34 = arith.extui %33 : vector<7x8x128xi1> to vector<7x8x128xi32>
    %35 = arith.addi %23, %34 : vector<7x8x128xi32>
    %36 = vector.shape_cast %30 : vector<8x128xf32> to vector<1x8x128xf32>
    %37 = vector.broadcast %36 : vector<1x8x128xf32> to vector<7x8x128xf32>
    %38 = arith.cmpf ole, %37, %14 : vector<7x8x128xf32>
    %39 = arith.extui %38 : vector<7x8x128xi1> to vector<7x8x128xi32>
    %40 = arith.addi %28, %39 : vector<7x8x128xi32>
    %41 = vector.extract_strided_slice %14 {offsets = [2, 0, 0], sizes = [1, 8, 128], strides = [1, 1, 1]} : vector<7x8x128xf32> to vector<1x8x128xf32>
    %42 = vector.shape_cast %41 : vector<1x8x128xf32> to vector<8x128xf32>
    %43 = vector.shape_cast %42 : vector<8x128xf32> to vector<1x8x128xf32>
    %44 = vector.broadcast %43 : vector<1x8x128xf32> to vector<7x8x128xf32>
    %45 = arith.cmpf olt, %44, %14 : vector<7x8x128xf32>
    %46 = arith.extui %45 : vector<7x8x128xi1> to vector<7x8x128xi32>
    %47 = arith.addi %35, %46 : vector<7x8x128xi32>
    %48 = vector.shape_cast %42 : vector<8x128xf32> to vector<1x8x128xf32>
    %49 = vector.broadcast %48 : vector<1x8x128xf32> to vector<7x8x128xf32>
    %50 = arith.cmpf ole, %49, %14 : vector<7x8x128xf32>
    %51 = arith.extui %50 : vector<7x8x128xi1> to vector<7x8x128xi32>
    %52 = arith.addi %40, %51 : vector<7x8x128xi32>
    %53 = vector.extract_strided_slice %14 {offsets = [3, 0, 0], sizes = [1, 8, 128], strides = [1, 1, 1]} : vector<7x8x128xf32> to vector<1x8x128xf32>
    %54 = vector.shape_cast %53 : vector<1x8x128xf32> to vector<8x128xf32>
    %55 = vector.shape_cast %54 : vector<8x128xf32> to vector<1x8x128xf32>
    %56 = vector.broadcast %55 : vector<1x8x128xf32> to vector<7x8x128xf32>
    %57 = arith.cmpf olt, %56, %14 : vector<7x8x128xf32>
    %58 = arith.extui %57 : vector<7x8x128xi1> to vector<7x8x128xi32>
    %59 = arith.addi %47, %58 : vector<7x8x128xi32>
    %60 = vector.shape_cast %54 : vector<8x128xf32> to vector<1x8x128xf32>
    %61 = vector.broadcast %60 : vector<1x8x128xf32> to vector<7x8x128xf32>
    %62 = arith.cmpf ole, %61, %14 : vector<7x8x128xf32>
    %63 = arith.extui %62 : vector<7x8x128xi1> to vector<7x8x128xi32>
    %64 = arith.addi %52, %63 : vector<7x8x128xi32>
    %65 = vector.extract_strided_slice %14 {offsets = [4, 0, 0], sizes = [1, 8, 128], strides = [1, 1, 1]} : vector<7x8x128xf32> to vector<1x8x128xf32>
    %66 = vector.shape_cast %65 : vector<1x8x128xf32> to vector<8x128xf32>
    %67 = vector.shape_cast %66 : vector<8x128xf32> to vector<1x8x128xf32>
    %68 = vector.broadcast %67 : vector<1x8x128xf32> to vector<7x8x128xf32>
    %69 = arith.cmpf olt, %68, %14 : vector<7x8x128xf32>
    %70 = arith.extui %69 : vector<7x8x128xi1> to vector<7x8x128xi32>
    %71 = arith.addi %59, %70 : vector<7x8x128xi32>
    %72 = vector.shape_cast %66 : vector<8x128xf32> to vector<1x8x128xf32>
    %73 = vector.broadcast %72 : vector<1x8x128xf32> to vector<7x8x128xf32>
    %74 = arith.cmpf ole, %73, %14 : vector<7x8x128xf32>
    %75 = arith.extui %74 : vector<7x8x128xi1> to vector<7x8x128xi32>
    %76 = arith.addi %64, %75 : vector<7x8x128xi32>
    %77 = vector.extract_strided_slice %14 {offsets = [5, 0, 0], sizes = [1, 8, 128], strides = [1, 1, 1]} : vector<7x8x128xf32> to vector<1x8x128xf32>
    %78 = vector.shape_cast %77 : vector<1x8x128xf32> to vector<8x128xf32>
    %79 = vector.shape_cast %78 : vector<8x128xf32> to vector<1x8x128xf32>
    %80 = vector.broadcast %79 : vector<1x8x128xf32> to vector<7x8x128xf32>
    %81 = arith.cmpf olt, %80, %14 : vector<7x8x128xf32>
    %82 = arith.extui %81 : vector<7x8x128xi1> to vector<7x8x128xi32>
    %83 = arith.addi %71, %82 : vector<7x8x128xi32>
    %84 = vector.shape_cast %78 : vector<8x128xf32> to vector<1x8x128xf32>
    %85 = vector.broadcast %84 : vector<1x8x128xf32> to vector<7x8x128xf32>
    %86 = arith.cmpf ole, %85, %14 : vector<7x8x128xf32>
    %87 = arith.extui %86 : vector<7x8x128xi1> to vector<7x8x128xi32>
    %88 = arith.addi %76, %87 : vector<7x8x128xi32>
    %89 = vector.extract_strided_slice %14 {offsets = [6, 0, 0], sizes = [1, 8, 128], strides = [1, 1, 1]} : vector<7x8x128xf32> to vector<1x8x128xf32>
    %90 = vector.shape_cast %89 : vector<1x8x128xf32> to vector<8x128xf32>
    %91 = vector.shape_cast %90 : vector<8x128xf32> to vector<1x8x128xf32>
    %92 = vector.broadcast %91 : vector<1x8x128xf32> to vector<7x8x128xf32>
    %93 = arith.cmpf olt, %92, %14 : vector<7x8x128xf32>
    %94 = arith.extui %93 : vector<7x8x128xi1> to vector<7x8x128xi32>
    %95 = arith.addi %83, %94 : vector<7x8x128xi32>
    %96 = vector.shape_cast %90 : vector<8x128xf32> to vector<1x8x128xf32>
    %97 = vector.broadcast %96 : vector<1x8x128xf32> to vector<7x8x128xf32>
    %98 = arith.cmpf ole, %97, %14 : vector<7x8x128xf32>
    %99 = arith.extui %98 : vector<7x8x128xi1> to vector<7x8x128xi32>
    %100 = arith.addi %88, %99 : vector<7x8x128xi32>
    %c3_i32 = arith.constant 3 : i32
    %101 = vector.broadcast %c3_i32 : i32 to vector<7x8x128xi32>
    %102 = arith.cmpi sle, %95, %101 : vector<7x8x128xi32>
    %c3_i32_11 = arith.constant 3 : i32
    %103 = vector.broadcast %c3_i32_11 : i32 to vector<7x8x128xi32>
    %104 = arith.cmpi sgt, %100, %103 : vector<7x8x128xi32>
    %105 = arith.andi %102, %104 : vector<7x8x128xi1>
    %cst_12 = arith.constant 0xFF800000 : f32
    %106 = vector.broadcast %cst_12 : f32 to vector<7x8x128xf32>
    %107 = arith.select %105, %14, %106 : vector<7x8x128xi1>, vector<7x8x128xf32>
    %cst_13 = arith.constant dense<0xFF800000> : vector<8x128xf32>
    %108 = vector.multi_reduction <maximumf>, %107, %cst_13 [0] : vector<7x8x128xf32> to vector<8x128xf32>
    %c0_14 = arith.constant 0 : index
    %c0_15 = arith.constant 0 : index
    %109 = vector.load %arg6[%c0_14, %c0_15] : memref<8x128xf32, #tpu.memory_space<vmem>>, vector<8x128xf32>
    tpu.vector_store %arg6[%c0_14, %c0_15], %108 {strides = array<i32>} : memref<8x128xf32, #tpu.memory_space<vmem>>, vector<8x128xf32>,
    return
  }
  func.func @transform_0(%arg0: i32, %arg1: i32) -> (i32, i32) {
    %c0_i32 = arith.constant 0 : i32
    %c0_i32_0 = arith.constant 0 : i32
    return %arg0, %c0_i32 : i32, i32
  }
  func.func @transform_1(%arg0: i32, %arg1: i32) -> (i32, i32) {
    %c0_i32 = arith.constant 0 : i32
    %c0_i32_0 = arith.constant 0 : i32
    return %c0_i32, %arg1 : i32, i32
  }
  func.func @transform_2(%arg0: i32, %arg1: i32) -> (i32, i32) {
    %c0_i32 = arith.constant 0 : i32
    %c0_i32_0 = arith.constant 0 : i32
    return %c0_i32, %arg1 : i32, i32
  }
  func.func @transform_3(%arg0: i32, %arg1: i32) -> (i32, i32) {
    %c0_i32 = arith.constant 0 : i32
    %c0_i32_0 = arith.constant 0 : i32
    return %c0_i32, %arg1 : i32, i32
  }
  func.func @transform_4(%arg0: i32, %arg1: i32) -> (i32, i32) {
    %c0_i32 = arith.constant 0 : i32
    return %arg0, %arg1 : i32, i32
  }
}

</mosaic_0001>

<bundles_post_ra>
// kernel: tpu_custom_call.1
= control target key start
LH: loop header
LB: loop body
LE: loop exit
PB: predicated region body
PF: predicated region fallthrough
CT: control target
= control target key end

     0   :  { %9 = vsyncpa [#allocation4], 0  ;;  %s1466_s0 = inlined_call_operand.hbm [shape: f32[8,512], index: 0, kind: input, shape index: {}]   ;;  %s1467_s1 = inlined_call_operand.hbm [shape: bf16[128,128], index: 1, kind: input, shape index: {}]   ;;  %s1468_s2 = inlined_call_operand.hbm [shape: bf16[128,128], index: 2, kind: input, shape index: {}]   ;;  %s1469_s3 = inlined_call_operand.vmem [shape: f32[1,128], index: 3, kind: input, shape index: {}]   ;;  %s1470_s4 = inlined_call_operand.hbm [shape: f32[8,128], index: 4, kind: output, shape index: {}]  }
   0x1   :  { %10 = vsyncpa [#allocation7], 0 }
   0x2   :  { %11 = vsyncpa [#allocation5], 0  ;;  %s1004_s15 = smov [#allocation6]   ;;  %s910_s19 = scalar_lea.hbm %s1467_s1, 1024 }
   0x3   :  { %s27_s16 = sshll.u32 %s1004_s15, 4  ;;  %p911_p0 = scmp.ne.s32.totalorder %s1467_s1, %s910_s19  ;;  %s28_s16 = int_to_ptr.vmem [resolvable:$true] %s27_s16 }
   0x4   :  { %p914_p1 = scmp.lt.u32.totalorder %s910_s19, %s1467_s1 }
   0x6   :  { %p916_p2 = pnand %p914_p1, %p911_p0 }
   0x8   :  { %919 = shalt.err (!%p916_p2)
}
   0x9   :  { %s920_s24 = scalar_lea.vmem %s28_s16, 1024  ;;  %p925_p4 = scmp.lt.s32.totalorder %s28_s16, %s28_s16 }
   0xa   :  { %p921_p3 = scmp.ne.s32.totalorder %s28_s16, %s920_s24  ;;  %p926_p5 = scmp.lt.s32.totalorder %s920_s24, %s920_s24 }
   0xc   :  { %p927_p6 = por %p926_p5, %p925_p4 }
   0xe   :  { %p928_p7 = pnand %p927_p6, %p921_p3 }
  0x10   :  { %931 = shalt.err (!%p928_p7)
}
  0x11   :  { %s1005_s25 = smov 64   ;;  %s1006_s26 = smov 4  }
  0x12   :  { %33 = dma.hbm_to_vmem [thread:$0]  %s1467_s1, 1024, %s28_s16, [#allocation7], %s1005_s25, %s1005_s25, %s1006_s26  }
  0x13   :  { %s1007_s29 = smov [#allocation3]   ;;  %s1008_s5 = smov [#allocation8]  }
  0x14   :  { %s18_s30 = sshll.u32 %s1007_s29, 4  ;;  %s39_s6 = sshll.u32 %s1008_s5, 4  ;;  %s19_s30 = int_to_ptr.vmem [resolvable:$true] %s18_s30  ;;  %s40_s6 = int_to_ptr.vmem [resolvable:$true] %s39_s6 }
  0x15   :  { %s932_s9 = scalar_lea.hbm %s1466_s0, 512 }
  0x16   :  { %p933_p8 = scmp.ne.s32.totalorder %s1466_s0, %s932_s9  ;;  %p936_p9 = scmp.lt.u32.totalorder %s932_s9, %s1466_s0 }
  0x18   :  { %p938_p10 = pnand %p936_p9, %p933_p8 }
  0x1a   :  { %941 = shalt.err (!%p938_p10)
}
  0x1b   :  { %s942_s1 = scalar_lea.vmem %s19_s30, 512  ;;  %p947_p12 = scmp.lt.s32.totalorder %s19_s30, %s19_s30 }
  0x1c   :  { %p943_p11 = scmp.ne.s32.totalorder %s19_s30, %s942_s1  ;;  %p948_p13 = scmp.lt.s32.totalorder %s942_s1, %s942_s1 }
  0x1e   :  { %p949_p0 = por %p948_p13, %p947_p12 }
  0x20   :  { %p950_p1 = pnand %p949_p0, %p943_p11 }
  0x22   :  { %953 = shalt.err (!%p950_p1)
}
  0x23   :  { %21 = dma.hbm_to_vmem [thread:$0]  %s1466_s0, 512, %s19_s30, [#allocation4]  }
  0x24   :  { %s954_s18 = scalar_lea.hbm %s1468_s2, 1024 }
  0x25   :  { %p955_p2 = scmp.ne.s32.totalorder %s1468_s2, %s954_s18  ;;  %p958_p3 = scmp.lt.u32.totalorder %s954_s18, %s1468_s2 }
  0x27   :  { %p960_p4 = pnand %p958_p3, %p955_p2 }
  0x29   :  { %963 = shalt.err (!%p960_p4)
}
  0x2a   :  { %s964_s23 = scalar_lea.vmem %s40_s6, 1024  ;;  %p969_p6 = scmp.lt.s32.totalorder %s40_s6, %s40_s6 }
  0x2b   :  { %p965_p5 = scmp.ne.s32.totalorder %s40_s6, %s964_s23  ;;  %p970_p7 = scmp.lt.s32.totalorder %s964_s23, %s964_s23 }
  0x2d   :  { %p971_p8 = por %p970_p7, %p969_p6 }
  0x2f   :  { %p972_p9 = pnand %p971_p8, %p965_p5 }
  0x31   :  { %975 = shalt.err (!%p972_p9)
}
  0x32   :  { %45 = dma.hbm_to_vmem [thread:$0]  %s1468_s2, 1024, %s40_s6, [#allocation7], %s1005_s25, %s1005_s25, %s1006_s26  }
  0x33   :  { %998 = dma.done.wait [#allocation4], 512  }
  0x34   :  { %999 = vsyncadd [#allocation4], 4294966784 }
  0x35   :  { %1000 = dma.done.wait [#allocation7], 2048  }
  0x36   :  { %1001 = vsyncadd [#allocation7], 4294965248  ;;  %v62_v0 = vld [vmem:[#allocation3] sm:$0xff]  ;;  %v64_v1 = vld [vmem:[#allocation3 + $0x10] sm:$0xff]  ;;  %vm78_vm0 = vcmask 523264   ;;  %vm90_vm1 = vcmask 1043456  }
  0x37   :  { %v63_v2 = vld [vmem:[#allocation3 + $0x8] sm:$0xff]  ;;  %v1078_v3 = vpack.c.bf16 %v62_v0, %v62_v0  ;;  %v1080_v4 = vpack.c.bf16 %v64_v1, %v64_v1  ;;  %v65_v6 = vld [vmem:[#allocation3 + $0x18] sm:$0xff]  ;;  %v890_v8 = vld [vmem:[#allocation6] sm:$0xff]  }
  0x38   :  { %v1082_v5 = vpack.c.bf16 %v63_v2, %v63_v2  ;;  %v69_v7 = vpack.c.bf16 %v65_v6, %v65_v6  ;;  %v891_v11 = vld [vmem:[#allocation8] sm:$0xff]   ;;  %835 = vmatprep.subr.bf16.mxu0 %v890_v8  ;;  %v892_v13 = vld [vmem:[#allocation6 + $0x8] sm:$0xff]   ;;  %v894_v16 = vld [vmem:[#allocation6 + $0x10] sm:$0xff]  }
  0x39   :  { %v72_v9 = vrot.slane %v1078_v3, 4  ;;  %v81_v10 = vrot.slane %v1080_v4, 4  ;;  %v893_v15 = vld [vmem:[#allocation8 + $0x8] sm:$0xff]   ;;  %859 = vmatprep.subr.bf16.mxu1 %v891_v11  ;;  %836 = vmatpush3.bf16.msra.mxu0 %v890_v8  ;;  %v895_v17 = vld [vmem:[#allocation8 + $0x10] sm:$0xff]   ;;  %v896_v18 = vld [vmem:[#allocation6 + $0x18] sm:$0xff]  }
  0x3a   :  { %v73_v12 = vrot.slane %v1082_v5, 4  ;;  %130 = vst [vmem:[#allocation2 + $0x18] sm:$0xf] %v69_v7  ;;  %v86_v14 = vrot.slane %v69_v7, 4  ;;  %860 = vmatpush3.bf16.msra.mxu1 %v891_v11  ;;  %837 = vmatprep.subr.bf16.mxu0 %v892_v13  ;;  %v897_v19 = vld [vmem:[#allocation8 + $0x18] sm:$0xff]   ;;  %v898_v20 = vld [vmem:[#allocation6 + $0x20] sm:$0xff]  }
  0x3b   :  { %74 = vrot.lane.b32.xlu0 %v72_v9, %s1005_s25  ;;  %82 = vrot.lane.b32.xlu1 %v81_v10, %s1005_s25  ;;  %v899_v21 = vld [vmem:[#allocation8 + $0x20] sm:$0xff]   ;;  %v900_v22 = vld [vmem:[#allocation6 + $0x28] sm:$0xff]   ;;  %v902_v24 = vld [vmem:[#allocation6 + $0x30] sm:$0xff]  }
  0x3c   :  { %861 = vmatprep.subr.bf16.mxu1 %v893_v15  ;;  %v901_v23 = vld [vmem:[#allocation8 + $0x28] sm:$0xff]   ;;  %v903_v25 = vld [vmem:[#allocation8 + $0x30] sm:$0xff]   ;;  %v904_v26 = vld [vmem:[#allocation6 + $0x38] sm:$0xff]  }
  0x3d   :  { %838 = vmatpush3.bf16.msra.mxu0 %v892_v13  ;;  %v905_v27 = vld [vmem:[#allocation8 + $0x38] sm:$0xff]   ;;  %v809_v54 = vld [vmem:[%s1469_s3] ss:$0 sm:$0xff]  ;;  %s1010_s3 = smov [#allocation9]  }
  0x3e   :  { %862 = vmatpush3.bf16.msra.mxu1 %v893_v15  ;;  %839 = vmatprep.subr.bf16.mxu0 %v894_v16  ;;  %v1009_v15 = vmov 0   ;;  %s772_s26 = sshll.u32 %s1010_s3, 4  ;;  %s773_s26 = int_to_ptr.vmem [resolvable:$true] %s772_s26 }
  0x3f   :  { %76 = vrot.lane.b32.xlu0 %v73_v12, %s1005_s25  ;;  %87 = vrot.lane.b32.xlu1 %v86_v14, %s1005_s25  ;;  %s976_s27 = scalar_lea.vmem %s773_s26, 128  ;;  %p981_p11 = scmp.lt.s32.totalorder %s773_s26, %s773_s26 }
  0x40   :  { %863 = vmatprep.subr.bf16.mxu1 %v895_v17  ;;  %p977_p10 = scmp.ne.s32.totalorder %s773_s26, %s976_s27  ;;  %p982_p12 = scmp.lt.s32.totalorder %s976_s27, %s976_s27 }
  0x41   :  { %840 = vmatpush3.bf16.msra.mxu0 %v894_v16  ;;  %v909_v47 = vld [vmem:[#allocation2 + $0x18] ss:$0 sps:$4 sm:$0xff]  }
  0x42   :  { %864 = vmatpush3.bf16.msra.mxu1 %v895_v17  ;;  %841 = vmatprep.subr.bf16.mxu0 %v896_v18  ;;  %p983_p13 = por %p982_p12, %p981_p11 }
  0x43   :  { %865 = vmatprep.subr.bf16.mxu1 %v897_v19 }
  0x44   :  { %p984_p0 = pnand %p983_p13, %p977_p10 }
  0x45   :  { %842 = vmatpush3.bf16.msra.mxu0 %v896_v18 }
  0x46   :  { %866 = vmatpush3.bf16.msra.mxu1 %v897_v19  ;;  %843 = vmatprep.subr.bf16.mxu0 %v898_v20 }
  0x47   :  { %867 = vmatprep.subr.bf16.mxu1 %v899_v21 }
  0x49   :  { %844 = vmatpush3.bf16.msra.mxu0 %v898_v20 }
  0x4a   :  { %868 = vmatpush3.bf16.msra.mxu1 %v899_v21  ;;  %845 = vmatprep.subr.bf16.mxu0 %v900_v22 }
  0x4b   :  { %869 = vmatprep.subr.bf16.mxu1 %v901_v23 }
  0x4d   :  { %846 = vmatpush3.bf16.msra.mxu0 %v900_v22 }
  0x4e   :  { %870 = vmatpush3.bf16.msra.mxu1 %v901_v23  ;;  %847 = vmatprep.subr.bf16.mxu0 %v902_v24 }
  0x4f   :  { %871 = vmatprep.subr.bf16.mxu1 %v903_v25 }
  0x51   :  { %848 = vmatpush3.bf16.msra.mxu0 %v902_v24 }
  0x52   :  { %872 = vmatpush3.bf16.msra.mxu1 %v903_v25  ;;  %849 = vmatprep.subr.bf16.mxu0 %v904_v26 }
  0x53   :  { %873 = vmatprep.subr.bf16.mxu1 %v905_v27 }
  0x55   :  { %850 = vmatpush3.bf16.msra.mxu0 %v904_v26 }
  0x56   :  { %874 = vmatpush3.bf16.msra.mxu1 %v905_v27 }
  0xad   :  { %v75_v28 = vpop.permute.xlu0 %74  ;;  %v83_v29 = vpop.permute.xlu1 %82 }
  0xb1   :  { %v77_v30 = vpop.permute.xlu0 %76  ;;  %v88_v31 = vpop.permute.xlu1 %87 }
  0xb2   :  { %v79_v32 = vsel %vm78_vm0, %v75_v28, %v77_v30  ;;  %v84_v33 = vsel %vm78_vm0, %v77_v30, %v83_v29  ;;  %v89_v34 = vsel %vm78_vm0, %v83_v29, %v88_v31 }
  0xb3   :  { %v93_v35 = vsel %vm90_vm1, %v1078_v3, %v79_v32  ;;  %v96_v36 = vsel %vm90_vm1, %v1082_v5, %v84_v33  ;;  %v99_v37 = vsel %vm90_vm1, %v1080_v4, %v89_v34 }
  0xb4   :  { %v782_v38 = vcombine.low %v93_v35, %v93_v35  ;;  %v783_v39 = vcombine.high %v93_v35, %v93_v35  ;;  %v784_v40 = vcombine.low %v96_v36, %v96_v36  ;;  %v785_v41 = vcombine.high %v96_v36, %v96_v36 }
  0xb5   :  { %v786_v42 = vcombine.low %v99_v37, %v99_v37  ;;  %v787_v43 = vcombine.high %v99_v37, %v99_v37 }
  0xb6   :  { %124 = vst [vmem:[#allocation2] sm:$0xf] %v782_v38  ;;  %125 = vst [vmem:[#allocation2 + $0x4] sm:$0xf] %v783_v39 }
  0xb7   :  { %126 = vst [vmem:[#allocation2 + $0x8] sm:$0xf] %v784_v40  ;;  %127 = vst [vmem:[#allocation2 + $0xc] sm:$0xf] %v785_v41 }
  0xb8   :  { %128 = vst [vmem:[#allocation2 + $0x10] sm:$0xf] %v786_v42  ;;  %129 = vst [vmem:[#allocation2 + $0x14] sm:$0xf] %v787_v43 }
  0xbd   :  { %v906_v44 = vld [vmem:[#allocation2] sm:$0xff]  }
  0xbe   :  { %v907_v45 = vld [vmem:[#allocation2 + $0x8] sm:$0xff]   ;;  %851 = vmatprep.mubr.bf16.mxu0 %v906_v44  ;;  %875 = vmatprep.mubr.bf16.mxu1 %v906_v44 }
  0xbf   :  { %v908_v46 = vld [vmem:[#allocation2 + $0x10] sm:$0xff]   ;;  %852 = vmatmul.mubr.bf16.vlgmr.msra.gmra.mrb[0].mxu0 %v907_v45  ;;  %876 = vmatmul.mubr.bf16.vlgmr.msra.gmra.mrb[0].mxu1 %v907_v45 }
  0xc0   :  { %855 = vmatprep.mubr.bf16.mxu0 %v908_v46  ;;  %879 = vmatprep.mubr.bf16.mxu1 %v908_v46 }
  0xc7   :  { %856 = vmatmul.mubr.bf16.gmra.mrb[4].mxu0 %v909_v47  ;;  %880 = vmatmul.mubr.bf16.gmra.mrb[4].mxu1 %v909_v47 }
 0x192   :  { %v853_v48 = vpop.f32.mrb[0].mxu0  ;;  %v877_v49 = vpop.f32.mrb[0].mxu1 }
 0x193   :  { %v418_v50 = vmul.f32 %v853_v48, %v853_v48  ;;  %v425_v51 = vmul.f32 %v877_v49, %v877_v49  ;;  %v258_v52 = vpop.f32.mrb[1].mxu0  ;;  %v386_v53 = vpop.f32.mrb[1].mxu1 }
 0x194   :  { %v416_v55 = vmul.f32 %v258_v52, %v258_v52  ;;  %v423_v56 = vmul.f32 %v386_v53, %v386_v53  ;;  %v854_v57 = vpop.f32.mrb[2].mxu0  ;;  %v878_v58 = vpop.f32.mrb[2].mxu1 }
 0x195   :  { %v432_v59 = vadd.f32 %v425_v51, %v418_v50  ;;  %v419_v60 = vmul.f32 %v854_v57, %v854_v57  ;;  %v426_v61 = vmul.f32 %v878_v58, %v878_v58  ;;  %v261_v62 = vpop.f32.mrb[3].mxu0  ;;  %v389_v63 = vpop.f32.mrb[3].mxu1 }
 0x196   :  { %v430_v0 = vadd.f32 %v423_v56, %v416_v55  ;;  %v417_v1 = vmul.f32 %v261_v62, %v261_v62  ;;  %v424_v2 = vmul.f32 %v389_v63, %v389_v63 }
 0x197   :  { %v1097_v3 = vmul.f32 %v809_v54, %v432_v59  ;;  %v433_v4 = vadd.f32 %v426_v61, %v419_v60 }
 0x198   :  { %v1099_v5 = vmul.f32 %v809_v54, %v430_v0  ;;  %v431_v6 = vadd.f32 %v424_v2, %v417_v1 }
 0x199   :  { %v1101_v7 = vmul.f32 %v809_v54, %v433_v4 }
 0x19a   :  { %v1103_v8 = vmul.f32 %v809_v54, %v431_v6  ;;  %v857_v9 = vpop.f32.mrb[4].mxu0  ;;  %v881_v10 = vpop.f32.mrb[4].mxu1  ;;  %vm453_vm2 = vcmp.lt.f32.partialorder %v1099_v5, %v1097_v3  ;;  %vm465_vm3 = vcmp.le.f32.partialorder %v1099_v5, %v1099_v5  ;;  %vm467_vm4 = vcmp.le.f32.partialorder %v1099_v5, %v1097_v3 }
 0x19b   :  { %v422_v11 = vmul.f32 %v857_v9, %v857_v9  ;;  %v429_v12 = vmul.f32 %v881_v10, %v881_v10  ;;  %v274_v13 = vpop.f32.mrb[5].mxu0  ;;  %v402_v14 = vpop.f32.mrb[5].mxu1  ;;  %vm454_vm5 = vcmp.lt.f32.partialorder %v1099_v5, %v1101_v7  ;;  %v460_v16 = vsel %vm453_vm2, 1, %v1009_v15 }
 0x19c   :  { %v420_v17 = vmul.f32 %v274_v13, %v274_v13  ;;  %v427_v18 = vmul.f32 %v402_v14, %v402_v14  ;;  %v858_v19 = vpop.f32.mrb[6].mxu0  ;;  %v882_v20 = vpop.f32.mrb[6].mxu1  ;;  %vm452_vm6 = vcmp.lt.f32.partialorder %v1099_v5, %v1103_v8  ;;  %v461_v21 = vsel %vm454_vm5, 1, %v1009_v15 }
 0x19d   :  { %v436_v22 = vadd.f32 %v429_v12, %v422_v11  ;;  %v277_v23 = vpop.f32.mrb[7].mxu0  ;;  %v405_v24 = vpop.f32.mrb[7].mxu1  ;;  %v1118_v25 = vsel %vm452_vm6, 1, %v1009_v15  ;;  %vm466_vm7 = vcmp.le.f32.partialorder %v1099_v5, %v1103_v8  ;;  %vm468_vm8 = vcmp.le.f32.partialorder %v1099_v5, %v1101_v7 }
 0x19e   :  { %v434_v26 = vadd.f32 %v427_v18, %v420_v17  ;;  %v421_v27 = vmul.f32 %v277_v23, %v277_v23  ;;  %v428_v28 = vmul.f32 %v405_v24, %v405_v24  ;;  %v472_v29 = vsel %vm465_vm3, 1, %v1009_v15 }
 0x19f   :  { %v1128_v30 = vmul.f32 %v809_v54, %v436_v22  ;;  %v473_v31 = vsel %vm466_vm7, 1, %v1009_v15  ;;  %v474_v32 = vsel %vm467_vm4, 1, %v1009_v15  ;;  %v475_v33 = vsel %vm468_vm8, 1, %v1009_v15 }
 0x1a0   :  { %v1136_v34 = vmul.f32 %v809_v54, %v434_v26  ;;  %v435_v35 = vadd.f32 %v428_v28, %v421_v27  ;;  %vm479_vm9 = vcmp.lt.f32.partialorder %v1103_v8, %v1099_v5  ;;  %vm481_vm10 = vcmp.lt.f32.partialorder %v1103_v8, %v1097_v3 }
 0x1a1   :  { %vm457_vm11 = vcmp.lt.f32.partialorder %v1099_v5, %v1128_v30  ;;  %vm471_vm12 = vcmp.le.f32.partialorder %v1099_v5, %v1128_v30  ;;  %vm482_vm13 = vcmp.lt.f32.partialorder %v1103_v8, %v1101_v7  ;;  %vm485_vm14 = vcmp.lt.f32.partialorder %v1103_v8, %v1128_v30 }
 0x1a2   :  { %v1150_v36 = vmul.f32 %v809_v54, %v435_v35  ;;  %vm455_vm15 = vcmp.lt.f32.partialorder %v1099_v5, %v1136_v34  ;;  %v464_v37 = vsel %vm457_vm11, 1, %v1009_v15  ;;  %vm469_vm0 = vcmp.le.f32.partialorder %v1099_v5, %v1136_v34 }
 0x1a3   :  { %v462_v38 = vsel %vm455_vm15, 1, %v1009_v15  ;;  %v476_v39 = vsel %vm469_vm0, 1, %v1009_v15  ;;  %v478_v40 = vsel %vm471_vm12, 1, %v1009_v15  ;;  %vm483_vm1 = vcmp.lt.f32.partialorder %v1103_v8, %v1136_v34 }
 0x1a4   :  { %vm456_vm2 = vcmp.lt.f32.partialorder %v1099_v5, %v1150_v36  ;;  %vm470_vm3 = vcmp.le.f32.partialorder %v1099_v5, %v1150_v36  ;;  %vm484_vm4 = vcmp.lt.f32.partialorder %v1103_v8, %v1150_v36  ;;  %v486_v41 = vsel %vm479_vm9, 1, %v1009_v15 }
 0x1a5   :  { %v463_v42 = vsel %vm456_vm2, 1, %v1009_v15  ;;  %v477_v43 = vsel %vm470_vm3, 1, %v1009_v15  ;;  %v488_v44 = vsel %vm481_vm10, 1, %v1009_v15  ;;  %v489_v45 = vsel %vm482_vm13, 1, %v1009_v15 }
 0x1a6   :  { %v490_v46 = vsel %vm483_vm1, 1, %v1009_v15  ;;  %v491_v47 = vsel %vm484_vm4, 1, %v1009_v15  ;;  %v492_v48 = vsel %vm485_vm14, 1, %v1009_v15  ;;  %v1188_v49 = vadd.s32 %v488_v44, %v460_v16 }
 0x1a7   :  { %v496_v50 = vadd.s32 %v489_v45, %v461_v21  ;;  %v497_v51 = vadd.s32 %v490_v46, %v462_v38  ;;  %v498_v52 = vadd.s32 %v491_v47, %v463_v42  ;;  %v499_v53 = vadd.s32 %v492_v48, %v464_v37 }
 0x1a8   :  { %vm500_vm5 = vcmp.le.f32.partialorder %v1103_v8, %v1099_v5  ;;  %vm501_vm6 = vcmp.le.f32.partialorder %v1103_v8, %v1103_v8  ;;  %vm502_vm7 = vcmp.le.f32.partialorder %v1103_v8, %v1097_v3  ;;  %vm503_vm8 = vcmp.le.f32.partialorder %v1103_v8, %v1101_v7 }
 0x1a9   :  { %vm544_vm9 = vcmp.le.f32.partialorder %v1097_v3, %v1097_v3  ;;  %vm504_vm10 = vcmp.le.f32.partialorder %v1103_v8, %v1136_v34  ;;  %vm505_vm11 = vcmp.le.f32.partialorder %v1103_v8, %v1150_v36  ;;  %vm506_vm12 = vcmp.le.f32.partialorder %v1103_v8, %v1128_v30 }
 0x1aa   :  { %v507_v54 = vsel %vm500_vm5, 1, %v1009_v15  ;;  %v508_v55 = vsel %vm501_vm6, 1, %v1009_v15  ;;  %v509_v56 = vsel %vm502_vm7, 1, %v1009_v15  ;;  %v510_v57 = vsel %vm503_vm8, 1, %v1009_v15 }
 0x1ab   :  { %v511_v58 = vsel %vm504_vm10, 1, %v1009_v15  ;;  %v512_v59 = vsel %vm505_vm11, 1, %v1009_v15  ;;  %v513_v60 = vsel %vm506_vm12, 1, %v1009_v15  ;;  %v514_v61 = vadd.s32 %v507_v54, %v472_v29 }
 0x1ac   :  { %v515_v62 = vadd.s32 %v508_v55, %v473_v31  ;;  %v516_v63 = vadd.s32 %v509_v56, %v474_v32  ;;  %v517_v0 = vadd.s32 %v510_v57, %v475_v33  ;;  %v518_v1 = vadd.s32 %v511_v58, %v476_v39 }
 0x1ad   :  { %v519_v2 = vadd.s32 %v512_v59, %v477_v43  ;;  %v520_v4 = vadd.s32 %v513_v60, %v478_v40  ;;  %vm521_vm13 = vcmp.lt.f32.partialorder %v1097_v3, %v1099_v5  ;;  %vm522_vm14 = vcmp.lt.f32.partialorder %v1097_v3, %v1103_v8 }
 0x1ae   :  { %vm524_vm15 = vcmp.lt.f32.partialorder %v1097_v3, %v1101_v7  ;;  %vm525_vm0 = vcmp.lt.f32.partialorder %v1097_v3, %v1136_v34  ;;  %vm526_vm1 = vcmp.lt.f32.partialorder %v1097_v3, %v1150_v36  ;;  %vm527_vm2 = vcmp.lt.f32.partialorder %v1097_v3, %v1128_v30 }
 0x1af   :  { %v528_v6 = vsel %vm521_vm13, 1, %v1009_v15  ;;  %v529_v9 = vsel %vm522_vm14, 1, %v1009_v15  ;;  %v531_v10 = vsel %vm524_vm15, 1, %v1009_v15  ;;  %v532_v11 = vsel %vm525_vm0, 1, %v1009_v15 }
 0x1b0   :  { %v533_v12 = vsel %vm526_vm1, 1, %v1009_v15  ;;  %v534_v13 = vsel %vm527_vm2, 1, %v1009_v15  ;;  %v535_v14 = vadd.s32 %v528_v6, %v486_v41  ;;  %v536_v16 = vadd.s32 %v529_v9, %v1118_v25 }
 0x1b1   :  { %v1232_v17 = vadd.s32 %v531_v10, %v496_v50  ;;  %v539_v18 = vadd.s32 %v532_v11, %v497_v51  ;;  %v540_v19 = vadd.s32 %v533_v12, %v498_v52  ;;  %v541_v20 = vadd.s32 %v534_v13, %v499_v53 }
 0x1b2   :  { %vm542_vm3 = vcmp.le.f32.partialorder %v1097_v3, %v1099_v5  ;;  %vm543_vm4 = vcmp.le.f32.partialorder %v1097_v3, %v1103_v8  ;;  %vm545_vm5 = vcmp.le.f32.partialorder %v1097_v3, %v1101_v7  ;;  %vm546_vm6 = vcmp.le.f32.partialorder %v1097_v3, %v1136_v34 }
 0x1b3   :  { %vm547_vm7 = vcmp.le.f32.partialorder %v1097_v3, %v1150_v36  ;;  %vm548_vm8 = vcmp.le.f32.partialorder %v1097_v3, %v1128_v30  ;;  %v549_v21 = vsel %vm542_vm3, 1, %v1009_v15  ;;  %v550_v22 = vsel %vm543_vm4, 1, %v1009_v15 }
 0x1b4   :  { %v551_v23 = vsel %vm544_vm9, 1, %v1009_v15  ;;  %v552_v24 = vsel %vm545_vm5, 1, %v1009_v15  ;;  %v553_v25 = vsel %vm546_vm6, 1, %v1009_v15  ;;  %v554_v26 = vsel %vm547_vm7, 1, %v1009_v15 }
 0x1b5   :  { %v555_v27 = vsel %vm548_vm8, 1, %v1009_v15  ;;  %v556_v28 = vadd.s32 %v549_v21, %v514_v61  ;;  %v557_v29 = vadd.s32 %v550_v22, %v515_v62  ;;  %v558_v31 = vadd.s32 %v551_v23, %v516_v63 }
 0x1b6   :  { %v559_v32 = vadd.s32 %v552_v24, %v517_v0  ;;  %v560_v33 = vadd.s32 %v553_v25, %v518_v1  ;;  %v561_v35 = vadd.s32 %v554_v26, %v519_v2  ;;  %v562_v37 = vadd.s32 %v555_v27, %v520_v4 }
 0x1b7   :  { %vm563_vm10 = vcmp.lt.f32.partialorder %v1101_v7, %v1099_v5  ;;  %vm564_vm9 = vcmp.lt.f32.partialorder %v1101_v7, %v1103_v8  ;;  %vm565_vm11 = vcmp.lt.f32.partialorder %v1101_v7, %v1097_v3  ;;  %vm567_vm12 = vcmp.lt.f32.partialorder %v1101_v7, %v1136_v34 }
 0x1b8   :  { %vm568_vm13 = vcmp.lt.f32.partialorder %v1101_v7, %v1150_v36  ;;  %vm569_vm14 = vcmp.lt.f32.partialorder %v1101_v7, %v1128_v30  ;;  %v570_v38 = vsel %vm563_vm10, 1, %v1009_v15  ;;  %v571_v39 = vsel %vm564_vm9, 1, %v1009_v15 }
 0x1b9   :  { %v572_v40 = vsel %vm565_vm11, 1, %v1009_v15  ;;  %v574_v41 = vsel %vm567_vm12, 1, %v1009_v15  ;;  %v575_v42 = vsel %vm568_vm13, 1, %v1009_v15  ;;  %v576_v43 = vsel %vm569_vm14, 1, %v1009_v15 }
 0x1ba   :  { %v577_v44 = vadd.s32 %v570_v38, %v535_v14  ;;  %v578_v45 = vadd.s32 %v571_v39, %v536_v16  ;;  %v579_v46 = vadd.s32 %v572_v40, %v1188_v49  ;;  %v1275_v47 = vadd.s32 %v574_v41, %v539_v18 }
 0x1bb   :  { %v582_v48 = vadd.s32 %v575_v42, %v540_v19  ;;  %v583_v50 = vadd.s32 %v576_v43, %v541_v20  ;;  %vm584_vm15 = vcmp.le.f32.partialorder %v1101_v7, %v1099_v5  ;;  %vm585_vm0 = vcmp.le.f32.partialorder %v1101_v7, %v1103_v8 }
 0x1bc   :  { %vm586_vm1 = vcmp.le.f32.partialorder %v1101_v7, %v1097_v3  ;;  %vm587_vm2 = vcmp.le.f32.partialorder %v1101_v7, %v1101_v7  ;;  %vm588_vm3 = vcmp.le.f32.partialorder %v1101_v7, %v1136_v34  ;;  %vm589_vm4 = vcmp.le.f32.partialorder %v1101_v7, %v1150_v36 }
 0x1bd   :  { %vm590_vm5 = vcmp.le.f32.partialorder %v1101_v7, %v1128_v30  ;;  %v591_v49 = vsel %vm584_vm15, 1, %v1009_v15  ;;  %v592_v51 = vsel %vm585_vm0, 1, %v1009_v15  ;;  %v593_v52 = vsel %vm586_vm1, 1, %v1009_v15 }
 0x1be   :  { %v594_v53 = vsel %vm587_vm2, 1, %v1009_v15  ;;  %v595_v54 = vsel %vm588_vm3, 1, %v1009_v15  ;;  %v596_v55 = vsel %vm589_vm4, 1, %v1009_v15  ;;  %v597_v56 = vsel %vm590_vm5, 1, %v1009_v15 }
 0x1bf   :  { %v598_v57 = vadd.s32 %v591_v49, %v556_v28  ;;  %v599_v58 = vadd.s32 %v592_v51, %v557_v29  ;;  %v600_v59 = vadd.s32 %v593_v52, %v558_v31  ;;  %v601_v60 = vadd.s32 %v594_v53, %v559_v32 }
 0x1c0   :  { %v602_v61 = vadd.s32 %v595_v54, %v560_v33  ;;  %v603_v62 = vadd.s32 %v596_v55, %v561_v35  ;;  %v604_v63 = vadd.s32 %v597_v56, %v562_v37  ;;  %vm605_vm6 = vcmp.lt.f32.partialorder %v1136_v34, %v1099_v5 }
 0x1c1   :  { %vm606_vm7 = vcmp.lt.f32.partialorder %v1136_v34, %v1103_v8  ;;  %vm607_vm8 = vcmp.lt.f32.partialorder %v1136_v34, %v1097_v3  ;;  %vm608_vm10 = vcmp.lt.f32.partialorder %v1136_v34, %v1101_v7  ;;  %vm610_vm9 = vcmp.lt.f32.partialorder %v1136_v34, %v1150_v36 }
 0x1c2   :  { %vm611_vm11 = vcmp.lt.f32.partialorder %v1136_v34, %v1128_v30  ;;  %v612_v0 = vsel %vm605_vm6, 1, %v1009_v15  ;;  %v613_v1 = vsel %vm606_vm7, 1, %v1009_v15  ;;  %v614_v2 = vsel %vm607_vm8, 1, %v1009_v15 }
 0x1c3   :  { %v615_v4 = vsel %vm608_vm10, 1, %v1009_v15  ;;  %v617_v6 = vsel %vm610_vm9, 1, %v1009_v15  ;;  %v618_v9 = vsel %vm611_vm11, 1, %v1009_v15  ;;  %v619_v10 = vadd.s32 %v612_v0, %v577_v44 }
 0x1c4   :  { %v620_v11 = vadd.s32 %v613_v1, %v578_v45  ;;  %v621_v12 = vadd.s32 %v614_v2, %v579_v46  ;;  %v622_v13 = vadd.s32 %v615_v4, %v1232_v17  ;;  %v1317_v14 = vadd.s32 %v617_v6, %v582_v48 }
 0x1c5   :  { %v625_v16 = vadd.s32 %v618_v9, %v583_v50  ;;  %vm626_vm12 = vcmp.le.f32.partialorder %v1136_v34, %v1099_v5  ;;  %vm627_vm13 = vcmp.le.f32.partialorder %v1136_v34, %v1103_v8  ;;  %vm628_vm14 = vcmp.le.f32.partialorder %v1136_v34, %v1097_v3 }
 0x1c6   :  { %vm629_vm15 = vcmp.le.f32.partialorder %v1136_v34, %v1101_v7  ;;  %vm630_vm0 = vcmp.le.f32.partialorder %v1136_v34, %v1136_v34  ;;  %vm631_vm1 = vcmp.le.f32.partialorder %v1136_v34, %v1150_v36  ;;  %vm632_vm2 = vcmp.le.f32.partialorder %v1136_v34, %v1128_v30 }
 0x1c7   :  { %v633_v17 = vsel %vm626_vm12, 1, %v1009_v15  ;;  %v634_v18 = vsel %vm627_vm13, 1, %v1009_v15  ;;  %v635_v19 = vsel %vm628_vm14, 1, %v1009_v15  ;;  %v636_v20 = vsel %vm629_vm15, 1, %v1009_v15 }
 0x1c8   :  { %v637_v21 = vsel %vm630_vm0, 1, %v1009_v15  ;;  %v638_v22 = vsel %vm631_vm1, 1, %v1009_v15  ;;  %v639_v23 = vsel %vm632_vm2, 1, %v1009_v15  ;;  %v640_v24 = vadd.s32 %v633_v17, %v598_v57 }
 0x1c9   :  { %v641_v25 = vadd.s32 %v634_v18, %v599_v58  ;;  %v642_v26 = vadd.s32 %v635_v19, %v600_v59  ;;  %v643_v27 = vadd.s32 %v636_v20, %v601_v60  ;;  %v644_v28 = vadd.s32 %v637_v21, %v602_v61 }
 0x1ca   :  { %v645_v29 = vadd.s32 %v638_v22, %v603_v62  ;;  %v646_v31 = vadd.s32 %v639_v23, %v604_v63  ;;  %vm647_vm3 = vcmp.lt.f32.partialorder %v1150_v36, %v1099_v5  ;;  %vm648_vm4 = vcmp.lt.f32.partialorder %v1150_v36, %v1103_v8 }
 0x1cb   :  { %vm649_vm5 = vcmp.lt.f32.partialorder %v1150_v36, %v1097_v3  ;;  %vm650_vm6 = vcmp.lt.f32.partialorder %v1150_v36, %v1101_v7  ;;  %vm651_vm7 = vcmp.lt.f32.partialorder %v1150_v36, %v1136_v34  ;;  %vm653_vm8 = vcmp.lt.f32.partialorder %v1150_v36, %v1128_v30 }
 0x1cc   :  { %v654_v32 = vsel %vm647_vm3, 1, %v1009_v15  ;;  %v655_v33 = vsel %vm648_vm4, 1, %v1009_v15  ;;  %v656_v35 = vsel %vm649_vm5, 1, %v1009_v15  ;;  %v657_v37 = vsel %vm650_vm6, 1, %v1009_v15 }
 0x1cd   :  { %v658_v38 = vsel %vm651_vm7, 1, %v1009_v15  ;;  %v660_v39 = vsel %vm653_vm8, 1, %v1009_v15  ;;  %v661_v40 = vadd.s32 %v654_v32, %v619_v10  ;;  %v662_v41 = vadd.s32 %v655_v33, %v620_v11 }
 0x1ce   :  { %v663_v42 = vadd.s32 %v656_v35, %v621_v12  ;;  %v664_v43 = vadd.s32 %v657_v37, %v622_v13  ;;  %v665_v44 = vadd.s32 %v658_v38, %v1275_v47  ;;  %v1359_v45 = vadd.s32 %v660_v39, %v625_v16 }
 0x1cf   :  { %vm668_vm10 = vcmp.le.f32.partialorder %v1150_v36, %v1099_v5  ;;  %vm669_vm9 = vcmp.le.f32.partialorder %v1150_v36, %v1103_v8  ;;  %vm670_vm11 = vcmp.le.f32.partialorder %v1150_v36, %v1097_v3  ;;  %vm671_vm12 = vcmp.le.f32.partialorder %v1150_v36, %v1101_v7 }
 0x1d0   :  { %vm672_vm13 = vcmp.le.f32.partialorder %v1150_v36, %v1136_v34  ;;  %vm673_vm14 = vcmp.le.f32.partialorder %v1150_v36, %v1150_v36  ;;  %vm674_vm15 = vcmp.le.f32.partialorder %v1150_v36, %v1128_v30  ;;  %v675_v46 = vsel %vm668_vm10, 1, %v1009_v15 }
 0x1d1   :  { %v676_v47 = vsel %vm669_vm9, 1, %v1009_v15  ;;  %v677_v48 = vsel %vm670_vm11, 1, %v1009_v15  ;;  %v678_v50 = vsel %vm671_vm12, 1, %v1009_v15  ;;  %v679_v49 = vsel %vm672_vm13, 1, %v1009_v15 }
 0x1d2   :  { %v680_v51 = vsel %vm673_vm14, 1, %v1009_v15  ;;  %v681_v52 = vsel %vm674_vm15, 1, %v1009_v15  ;;  %v682_v53 = vadd.s32 %v675_v46, %v640_v24  ;;  %v683_v54 = vadd.s32 %v676_v47, %v641_v25 }
 0x1d3   :  { %v684_v55 = vadd.s32 %v677_v48, %v642_v26  ;;  %v685_v56 = vadd.s32 %v678_v50, %v643_v27  ;;  %v686_v57 = vadd.s32 %v679_v49, %v644_v28  ;;  %v687_v58 = vadd.s32 %v680_v51, %v645_v29 }
 0x1d4   :  { %v688_v59 = vadd.s32 %v681_v52, %v646_v31  ;;  %vm689_vm0 = vcmp.lt.f32.partialorder %v1128_v30, %v1099_v5  ;;  %vm690_vm1 = vcmp.lt.f32.partialorder %v1128_v30, %v1103_v8  ;;  %vm691_vm2 = vcmp.lt.f32.partialorder %v1128_v30, %v1097_v3 }
 0x1d5   :  { %vm692_vm3 = vcmp.lt.f32.partialorder %v1128_v30, %v1101_v7  ;;  %vm693_vm4 = vcmp.lt.f32.partialorder %v1128_v30, %v1136_v34  ;;  %vm694_vm5 = vcmp.lt.f32.partialorder %v1128_v30, %v1150_v36  ;;  %v696_v60 = vsel %vm689_vm0, 1, %v1009_v15 }
 0x1d6   :  { %v697_v61 = vsel %vm690_vm1, 1, %v1009_v15  ;;  %v698_v62 = vsel %vm691_vm2, 1, %v1009_v15  ;;  %v699_v63 = vsel %vm692_vm3, 1, %v1009_v15  ;;  %v700_v0 = vsel %vm693_vm4, 1, %v1009_v15 }
 0x1d7   :  { %v701_v1 = vsel %vm694_vm5, 1, %v1009_v15  ;;  %v703_v2 = vadd.s32 %v696_v60, %v661_v40  ;;  %v704_v4 = vadd.s32 %v697_v61, %v662_v41  ;;  %v705_v6 = vadd.s32 %v698_v62, %v663_v42 }
 0x1d8   :  { %v706_v9 = vadd.s32 %v699_v63, %v664_v43  ;;  %v707_v10 = vadd.s32 %v700_v0, %v665_v44  ;;  %v708_v11 = vadd.s32 %v701_v1, %v1317_v14  ;;  %vm710_vm6 = vcmp.le.f32.partialorder %v1128_v30, %v1099_v5 }
 0x1d9   :  { %vm711_vm7 = vcmp.le.f32.partialorder %v1128_v30, %v1103_v8  ;;  %vm712_vm8 = vcmp.le.f32.partialorder %v1128_v30, %v1097_v3  ;;  %vm713_vm10 = vcmp.le.f32.partialorder %v1128_v30, %v1101_v7  ;;  %vm714_vm9 = vcmp.le.f32.partialorder %v1128_v30, %v1136_v34 }
 0x1da   :  { %vm715_vm11 = vcmp.le.f32.partialorder %v1128_v30, %v1150_v36  ;;  %vm716_vm12 = vcmp.le.f32.partialorder %v1128_v30, %v1128_v30  ;;  %v717_v12 = vsel %vm710_vm6, 1, %v1009_v15  ;;  %v718_v13 = vsel %vm711_vm7, 1, %v1009_v15 }
 0x1db   :  { %v719_v14 = vsel %vm712_vm8, 1, %v1009_v15  ;;  %v720_v16 = vsel %vm713_vm10, 1, %v1009_v15  ;;  %v721_v17 = vsel %vm714_vm9, 1, %v1009_v15  ;;  %v722_v18 = vsel %vm715_vm11, 1, %v1009_v15 }
 0x1dc   :  { %v723_v19 = vsel %vm716_vm12, 1, %v1009_v15  ;;  %v724_v20 = vadd.s32 %v717_v12, %v682_v53  ;;  %v725_v21 = vadd.s32 %v718_v13, %v683_v54  ;;  %v726_v22 = vadd.s32 %v719_v14, %v684_v55 }
 0x1dd   :  { %v727_v23 = vadd.s32 %v720_v16, %v685_v56  ;;  %v728_v24 = vadd.s32 %v721_v17, %v686_v57  ;;  %v729_v25 = vadd.s32 %v722_v18, %v687_v58  ;;  %v730_v26 = vadd.s32 %v723_v19, %v688_v59 }
 0x1de   :  { %vm731_vm13 = vcmp.le.s32.totalorder %v703_v2, 3  ;;  %vm732_vm14 = vcmp.le.s32.totalorder %v704_v4, 3  ;;  %vm733_vm15 = vcmp.le.s32.totalorder %v705_v6, 3  ;;  %vm738_vm0 = vcmp.gt.s32.totalorder %v724_v20, 3 }
 0x1df   :  { %vm739_vm1 = vcmp.gt.s32.totalorder %v725_v21, 3  ;;  %vm734_vm2 = vcmp.le.s32.totalorder %v706_v9, 3  ;;  %vm740_vm3 = vcmp.gt.s32.totalorder %v726_v22, 3  ;;  %vm741_vm4 = vcmp.gt.s32.totalorder %v727_v23, 3  ;;  %vm1422_vm5 = vmand %vm731_vm13, %vm738_vm0 }
 0x1e0   :  { %vm742_vm6 = vcmp.gt.s32.totalorder %v728_v24, 3  ;;  %vm1426_vm7 = vmand %vm732_vm14, %vm739_vm1  ;;  %v752_v28 = vsel %vm1422_vm5, %v1099_v5, -inf  ;;  %vm743_vm8 = vcmp.gt.s32.totalorder %v729_v25, 3  ;;  %vm735_vm9 = vcmp.le.s32.totalorder %v707_v10, 3 }
 0x1e1   :  { %vm1433_vm10 = vmand %vm733_vm15, %vm740_vm3  ;;  %v753_v31 = vsel %vm1426_vm7, %v1103_v8, -inf  ;;  %vm744_vm11 = vcmp.gt.s32.totalorder %v730_v26, 3  ;;  %vm736_vm13 = vcmp.le.s32.totalorder %v708_v11, 3  ;;  %vm737_vm15 = vcmp.le.s32.totalorder %v1359_v45, 3 }
 0x1e2   :  { %vm1440_vm12 = vmand %vm734_vm2, %vm741_vm4  ;;  %v754_v33 = vsel %vm1433_vm10, %v1097_v3, -inf }
 0x1e3   :  { %vm749_vm14 = vmand %vm735_vm9, %vm742_vm6  ;;  %v755_v5 = vsel %vm1440_vm12, %v1101_v7, -inf }
 0x1e4   :  { %vm750_vm0 = vmand %vm736_vm13, %vm743_vm8  ;;  %v756_v8 = vsel %vm749_vm14, %v1136_v34, -inf }
 0x1e5   :  { %vm751_vm1 = vmand %vm737_vm15, %vm744_vm11  ;;  %v757_v35 = vsel %vm750_vm0, %v1150_v36, -inf  ;;  %v759_v37 = vmax.f32 %v752_v28, %v756_v8 }
 0x1e6   :  { %v758_v38 = vsel %vm751_vm1, %v1128_v30, -inf  ;;  %v760_v39 = vmax.f32 %v753_v31, %v757_v35 }
 0x1e7   :  { %v761_v40 = vmax.f32 %v754_v33, %v758_v38 }
 0x1e8   :  { %v762_v3 = vmax.f32 %v759_v37, %v760_v39 }
 0x1e9   :  { %v763_v41 = vmax.f32 %v761_v40, %v755_v5 }
 0x1eb   :  { %v764_v42 = vmax.f32 %v762_v3, %v763_v41 }
 0x1ed   :  { %765 = vst [vmem:[#allocation9] sm:$0xff] %v764_v42 }
 0x1ee   :  { %987 = shalt.err (!%p984_p0)
}
 0x1ef   :  { %s988_s30 = scalar_lea.hbm %s1470_s4, 128 }
 0x1f0   :  { %p989_p1 = scmp.ne.s32.totalorder %s1470_s4, %s988_s30  ;;  %p992_p2 = scmp.lt.u32.totalorder %s988_s30, %s1470_s4 }
 0x1f2   :  { %p994_p3 = pnand %p992_p2, %p989_p1 }
 0x1f4   :  { %997 = shalt.err (!%p994_p3)
}
 0x1f5   :  { %775 = dma.vmem_to_hbm [thread:$0]  %s773_s26, 128, %s1470_s4, [#allocation5]  }
 0x1f6   :  { %1002 = dma.done.wait [#allocation5], 128  }
 0x1f7   :  { %1003 = vsyncadd [#allocation5], 4294967168 }
 0x1f8   :  { %779 = vsyncpa [#allocation4], 1 }
 0x1f9   :  { %780 = vsyncpa [#allocation7], 1 }
 0x1fa   :  { %781 = vsyncpa [#allocation5], 1 }

</bundles_post_ra>
